<compile_context>
chip_gen: v6e
topology: v6e:2x2x1
jax: 0.10.0
libtpu: 0.0.40
codegen_flags: <defaults>
</compile_context>

<pallas_src>
import functools

import jax
import jax.numpy as jnp
from jax.experimental import pallas as pl
from jax.experimental.pallas import tpu as pltpu


# ----------------------------------------------------------------------------
# Pallas kernels
# ----------------------------------------------------------------------------
def _conv3x3_s2_kernel(main_ref, halo_ref, w_ref, b_ref, o_ref, *,
                       TOH, OW, C, Cout):
    """3x3 / stride-2 conv on one (batch, output-row-tile) block.

    main_ref : (1, 2*TOH, OWp, 2*C)  column-pair-packed padded input rows
                                     [2*TOH*i, 2*TOH*(i+1))
    halo_ref : (1, 1, OWp, 2*C)      packed padded input row 2*TOH*(i+1)
    w_ref    : (9*C, Cout)           weight rows ordered as
                                     [(kh, kw in {0,1}, cin)..., (kh, kw=2, cin)...]
    b_ref    : (1, Cout)             bias (f32)
    o_ref    : (1, TOH, OW, Cout)
    """
    main = main_ref[0]                               # (2*TOH, OWp, 2C)
    halo = halo_ref[0]                               # (1, OWp, 2C)
    OWp = main.shape[1]
    pairs = main.reshape(TOH, 2, OWp, 2 * C)

    r0 = pairs[:, 0]                                 # input rows 2t     (kh=0)
    r1 = pairs[:, 1]                                 # input rows 2t + 1 (kh=1)
    if TOH > 1:                                      # input rows 2t + 2 (kh=2)
        r2 = jnp.concatenate([pairs[1:, 0], halo], axis=0)
    else:
        r2 = halo

    # kw=0 and kw=1 taps are a contiguous 2C chunk of the packed slab;
    # only the kw=2 tap needs the +1 column shift and a C-wide lane slice.
    chunks = [
        r0[:, 0:OW, :], r1[:, 0:OW, :], r2[:, 0:OW, :],                 # kw = 0, 1
        r0[:, 1:OW + 1, 0:C], r1[:, 1:OW + 1, 0:C], r2[:, 1:OW + 1, 0:C],  # kw = 2
    ]
    patches = jnp.concatenate(chunks, axis=-1)       # (TOH, OW, 9C)

    acc = jnp.dot(patches.reshape(TOH * OW, 9 * C), w_ref[...],
                  preferred_element_type=jnp.float32)   # (TOH*OW, Cout) f32
    acc = acc + b_ref[...]
    o_ref[0] = acc.reshape(TOH, OW, Cout).astype(o_ref.dtype)


def _avgpool2x2_kernel(x_ref, o_ref, *, TOH, OW, C):
    """2x2 / stride-2 average pool on one (batch, output-row-tile) block.

    x_ref : (1, 2*TOH, OW, 2*C)   column-pair-packed input rows
    o_ref : (1, TOH, OW, C)
    """
    x = x_ref[0].astype(jnp.float32)
    pairs = x.reshape(TOH, 2, OW, 2 * C)
    s = pairs[:, 0] + pairs[:, 1]                    # (TOH, OW, 2C)
    o_ref[0] = (0.25 * (s[..., :C] + s[..., C:])).astype(o_ref.dtype)


_VMEM_LIMIT = 48 * 1024 * 1024  # below v7x physical 64 MiB, above default scoped


# ----------------------------------------------------------------------------
# Wrappers (pallas_call plumbing)
# ----------------------------------------------------------------------------
def _conv_downsample(x_nchw, weight, bias, padding, kernel_size):
    """Equivalent of Conv2d(C, Cout, 3, stride=2, padding) [plus the
    asymmetric F.pad when padding == 0]."""
    N, C, H, W = x_nchw.shape
    Cout, Cin, K, _ = weight.shape
    assert Cin == C and K == kernel_size
    if K != 3:
        # TODO(synk): generalize halo/column-packing to kernel_size != 3
        raise NotImplementedError("Pallas conv path implemented for kernel_size=3")

    dtype = x_nchw.dtype
    itemsize = jnp.dtype(dtype).itemsize
    x = jnp.transpose(x_nchw, (0, 2, 3, 1))          # NHWC, keep input dtype

    if padding == 0:
        pad_h, pad_w = (0, 1), (0, 1)                # forward(): F.pad (0,1,0,1)
    else:
        pad_h, pad_w = (padding, padding), (padding, padding)
    Hp_nat = H + pad_h[0] + pad_h[1]
    Wp_nat = W + pad_w[0] + pad_w[1]
    OH = (Hp_nat - K) // 2 + 1
    OW = (Wp_nat - K) // 2 + 1

    # ---- output-row tiling: bound per-step VMEM (slab + im2col + f32 acc) ----
    per_out_row = (2 * 2 * (OW + 1) * 2 * C * itemsize   # main slab (dbl-buffered)
                   + 2 * OW * 9 * C * itemsize           # im2col patches + copies
                   + OW * Cout * 4                       # f32 accumulator
                   + 2 * OW * Cout * itemsize)           # output (dbl-buffered)
    TOH = int(max(1, min(OH, (10 << 20) // max(1, per_out_row))))
    nt = pl.cdiv(OH, TOH)
    OH_pad = nt * TOH

    # pad so every main slab (2*TOH rows) + 1 halo row is in-bounds, and the
    # width is even and covers column 2*OW (needed by the kw=2 tap)
    Hp_eff = max(Hp_nat, 2 * OH_pad + 1)
    Wp_eff = 2 * OW + 2
    x = jnp.pad(x, ((0, 0),
                    (pad_h[0], Hp_eff - H - pad_h[0]),
                    (pad_w[0], Wp_eff - W - pad_w[0]),
                    (0, 0)))
    # pack column pairs into channels: free row-major reshape, lane dim = 2*C
    OWp = Wp_eff // 2
    xp = x.reshape(N, Hp_eff, OWp, 2 * C)

    # weight (Cout, Cin, K, K) -> rows ordered [(kh, kw in {0,1}, cin)...,
    # (kh, kw=2, cin)...] to match the in-kernel packed-tap concatenation
    wt = jnp.transpose(weight, (2, 3, 1, 0)).astype(dtype)   # (kh, kw, cin, cout)
    w_r = jnp.concatenate([wt[:, 0:2].reshape(3 * 2 * C, Cout),
                           wt[:, 2].reshape(3 * C, Cout)], axis=0)
    b_r = bias.reshape(1, Cout).astype(jnp.float32)

    flops = 2 * N * OH_pad * OW * 9 * C * Cout
    bytes_accessed = (N * Hp_eff * OWp * 2 * C * itemsize
                      + N * OH_pad * OW * Cout * itemsize
                      + 9 * C * Cout * itemsize)

    kernel = functools.partial(_conv3x3_s2_kernel, TOH=TOH, OW=OW, C=C, Cout=Cout)
    out = pl.pallas_call(
        kernel,
        out_shape=jax.ShapeDtypeStruct((N, OH_pad, OW, Cout), dtype),
        grid=(N, nt),
        in_specs=[
            pl.BlockSpec((1, 2 * TOH, OWp, 2 * C), lambda n, i: (n, i, 0, 0)),
            pl.BlockSpec((1, 1, OWp, 2 * C),
                         lambda n, i: (n, 2 * TOH * (i + 1), 0, 0)),
            pl.BlockSpec((K * K * C, Cout), lambda n, i: (0, 0)),
            pl.BlockSpec((1, Cout), lambda n, i: (0, 0)),
        ],
        out_specs=pl.BlockSpec((1, TOH, OW, Cout), lambda n, i: (n, i, 0, 0)),
        compiler_params=pltpu.CompilerParams(
            dimension_semantics=("parallel", "parallel"),
            vmem_limit_bytes=_VMEM_LIMIT),
        cost_estimate=pl.CostEstimate(flops=flops, transcendentals=0,
                                      bytes_accessed=bytes_accessed),
    )(xp, xp, w_r, b_r)

    out = out[:, :OH]
    return jnp.transpose(out, (0, 3, 1, 2))          # back to NCHW


def _avgpool_downsample(x_nchw):
    """Equivalent of AvgPool2d(kernel_size=2, stride=2)."""
    N, C, H, W = x_nchw.shape
    OH, OW = H // 2, W // 2
    dtype = x_nchw.dtype
    itemsize = jnp.dtype(dtype).itemsize

    x = jnp.transpose(x_nchw, (0, 2, 3, 1))[:, :2 * OH, :2 * OW, :]   # NHWC

    per_out_row = (2 * 2 * OW * 2 * C * itemsize       # slab (dbl-buffered)
                   + OW * 2 * C * 4                    # f32 temps
                   + 2 * OW * C * itemsize)            # output (dbl-buffered)
    TOH = int(max(1, min(OH, (10 << 20) // max(1, per_out_row))))
    nt = pl.cdiv(OH, TOH)
    OH_pad = nt * TOH
    if OH_pad > OH:
        x = jnp.pad(x, ((0, 0), (0, 2 * (OH_pad - OH)), (0, 0), (0, 0)))
    # pack column pairs into channels (free row-major reshape)
    xp = x.reshape(N, 2 * OH_pad, OW, 2 * C)

    kernel = functools.partial(_avgpool2x2_kernel, TOH=TOH, OW=OW, C=C)
    out = pl.pallas_call(
        kernel,
        out_shape=jax.ShapeDtypeStruct((N, OH_pad, OW, C), dtype),
        grid=(N, nt),
        in_specs=[pl.BlockSpec((1, 2 * TOH, OW, 2 * C),
                               lambda n, i: (n, i, 0, 0))],
        out_specs=pl.BlockSpec((1, TOH, OW, C), lambda n, i: (n, i, 0, 0)),
        compiler_params=pltpu.CompilerParams(
            dimension_semantics=("parallel", "parallel"),
            vmem_limit_bytes=_VMEM_LIMIT),
    )(xp)

    out = out[:, :OH]
    return jnp.transpose(out, (0, 3, 1, 2))          # back to NCHW


# ----------------------------------------------------------------------------
# Module-equivalent wrapper
# ----------------------------------------------------------------------------
class Downsample2D:
    def __init__(self, channels, use_conv=False, out_channels=None, padding=1,
                 name='conv', kernel_size=3, norm_type=None, eps=None,
                 elementwise_affine=None, bias=True, key=None):
        self.channels = channels
        self.out_channels = out_channels or channels
        self.use_conv = use_conv
        self.padding = padding
        self.kernel_size = kernel_size
        self.name = name
        if norm_type is not None:
            # TODO(synk): ln_norm / rms_norm pre-norm paths not implemented
            raise NotImplementedError("norm_type is not supported here")
        if use_conv:
            if key is None:
                key = jax.random.PRNGKey(0)
            kw_, kb_ = jax.random.split(key)
            fan_in = channels * kernel_size * kernel_size
            bound = 1.0 / (fan_in ** 0.5)
            self.weight = jax.random.uniform(
                kw_, (self.out_channels, channels, kernel_size, kernel_size),
                jnp.float32, -bound, bound)
            if bias:
                self.bias = jax.random.uniform(
                    kb_, (self.out_channels,), jnp.float32, -bound, bound)
            else:
                self.bias = jnp.zeros((self.out_channels,), jnp.float32)
        else:
            assert self.channels == self.out_channels
            self.weight = None
            self.bias = None

    def __call__(self, hidden_states):
        assert hidden_states.shape[1] == self.channels
        if self.use_conv:
            return _conv_downsample(hidden_states, self.weight, self.bias,
                                    self.padding, self.kernel_size)
        return _avgpool_downsample(hidden_states)


# ----------------------------------------------------------------------------
if __name__ == "__main__":
    key = jax.random.PRNGKey(0)
    k_x, k_p, k_p0 = jax.random.split(key, 3)

    N, C, H, W = 2, 4, 16, 16
    x = jax.random.normal(k_x, (N, C, H, W), jnp.float32)

    # --- conv path (use_conv=True, padding=1, kernel 3, stride 2) -----------
    Cout = 8
    down_conv = Downsample2D(C, use_conv=True, out_channels=Cout, padding=1,
                             key=k_p)
    y = jax.block_until_ready(down_conv(x))
    assert y.shape == (N, Cout, H // 2, W // 2)

    ref = jax.lax.conv_general_dilated(
        x, down_conv.weight, window_strides=(2, 2), padding=((1, 1), (1, 1)),
        dimension_numbers=('NCHW', 'OIHW', 'NCHW'),
        precision=jax.lax.Precision.HIGHEST,
    ) + down_conv.bias.reshape(1, Cout, 1, 1)
    assert float(jnp.max(jnp.abs(y - ref))) < 5e-3

    # --- conv path with padding=0 (forward() applies asymmetric F.pad) ------
    down_conv0 = Downsample2D(C, use_conv=True, out_channels=Cout, padding=0,
                              key=k_p0)
    y0 = jax.block_until_ready(down_conv0(x))
    x_pad = jnp.pad(x, ((0, 0), (0, 0), (0, 1), (0, 1)))
    ref0 = jax.lax.conv_general_dilated(
        x_pad, down_conv0.weight, window_strides=(2, 2),
        padding=((0, 0), (0, 0)),
        dimension_numbers=('NCHW', 'OIHW', 'NCHW'),
        precision=jax.lax.Precision.HIGHEST,
    ) + down_conv0.bias.reshape(1, Cout, 1, 1)
    assert y0.shape == ref0.shape
    assert float(jnp.max(jnp.abs(y0 - ref0))) < 5e-3

    # --- avg-pool path (use_conv=False, default) ----------------------------
    down_pool = Downsample2D(C, use_conv=False)
    y2 = jax.block_until_ready(down_pool(x))
    assert y2.shape == (N, C, H // 2, W // 2)
    ref2 = jnp.mean(x.reshape(N, C, H // 2, 2, W // 2, 2), axis=(3, 5))
    assert float(jnp.max(jnp.abs(y2 - ref2))) < 1e-5

    print("KERNEL_OK")
</pallas_src>

<mosaic_0001>
module attributes {stable_mosaic.version = 11 : i64} {
  func.func @_conv3x3_s2_kernel(%arg0: i32, %arg1: i32, %arg2: memref<1x16x9x8xf32, #tpu.memory_space<vmem>>, %arg3: memref<1x1x9x8xf32, #tpu.memory_space<vmem>>, %arg4: memref<36x8xf32, #tpu.memory_space<vmem>>, %arg5: memref<1x8xf32, #tpu.memory_space<vmem>>, %arg6: memref<1x8x8x8xf32, #tpu.memory_space<vmem>>) attributes {dimension_semantics = [#tpu.dimension_semantics<parallel>, #tpu.dimension_semantics<parallel>], iteration_bounds = array<i64: 2, 1>, scalar_prefetch = 0 : i64, scratch_operands = 0 : i64, tpu.core_type = #tpu.core_type<tc>, window_params = [{transform_indices = @transform_0, window_bounds = array<i64: 1, 16, 9, 8>}, {transform_indices = @transform_1, window_bounds = array<i64: 1, 1, 9, 8>}, {pipeline_mode = #tpu.pipeline_mode<synchronous>, transform_indices = @transform_2, window_bounds = array<i64: 36, 8>}, {pipeline_mode = #tpu.pipeline_mode<synchronous>, transform_indices = @transform_3, window_bounds = array<i64: 1, 8>}, {transform_indices = @transform_4, window_bounds = array<i64: 1, 8, 8, 8>}]} {
    %c0 = arith.constant 0 : index
    %c0_0 = arith.constant 0 : index
    %c0_1 = arith.constant 0 : index
    %c0_2 = arith.constant 0 : index
    %0 = vector.load %arg2[%c0, %c0_0, %c0_1, %c0_2] : memref<1x16x9x8xf32, #tpu.memory_space<vmem>>, vector<1x16x9x8xf32>
    %1 = vector.shape_cast %0 : vector<1x16x9x8xf32> to vector<16x9x8xf32>
    %c0_3 = arith.constant 0 : index
    %c0_4 = arith.constant 0 : index
    %c0_5 = arith.constant 0 : index
    %c0_6 = arith.constant 0 : index
    %2 = vector.load %arg3[%c0_3, %c0_4, %c0_5, %c0_6] : memref<1x1x9x8xf32, #tpu.memory_space<vmem>>, vector<1x1x9x8xf32>
    %3 = vector.shape_cast %2 : vector<1x1x9x8xf32> to vector<1x9x8xf32>
    %4 = vector.shape_cast %1 : vector<16x9x8xf32> to vector<8x2x9x8xf32>
    %5 = vector.extract_strided_slice %4 {offsets = [0, 0, 0, 0], sizes = [8, 1, 9, 8], strides = [1, 1, 1, 1]} : vector<8x2x9x8xf32> to vector<8x1x9x8xf32>
    %6 = vector.shape_cast %5 : vector<8x1x9x8xf32> to vector<8x9x8xf32>
    %7 = vector.extract_strided_slice %4 {offsets = [0, 1, 0, 0], sizes = [8, 1, 9, 8], strides = [1, 1, 1, 1]} : vector<8x2x9x8xf32> to vector<8x1x9x8xf32>
    %8 = vector.shape_cast %7 : vector<8x1x9x8xf32> to vector<8x9x8xf32>
    %9 = vector.extract_strided_slice %4 {offsets = [1, 0, 0, 0], sizes = [7, 1, 9, 8], strides = [1, 1, 1, 1]} : vector<8x2x9x8xf32> to vector<7x1x9x8xf32>
    %10 = vector.shape_cast %9 : vector<7x1x9x8xf32> to vector<7x9x8xf32>
    %11 = tpu.concatenate %10, %3 in 0 : vector<7x9x8xf32>, vector<1x9x8xf32> -> vector<8x9x8xf32>
    %12 = vector.extract_strided_slice %6 {offsets = [0, 0, 0], sizes = [8, 8, 8], strides = [1, 1, 1]} : vector<8x9x8xf32> to vector<8x8x8xf32>
    %13 = vector.extract_strided_slice %8 {offsets = [0, 0, 0], sizes = [8, 8, 8], strides = [1, 1, 1]} : vector<8x9x8xf32> to vector<8x8x8xf32>
    %14 = vector.extract_strided_slice %11 {offsets = [0, 0, 0], sizes = [8, 8, 8], strides = [1, 1, 1]} : vector<8x9x8xf32> to vector<8x8x8xf32>
    %15 = vector.extract_strided_slice %6 {offsets = [0, 1, 0], sizes = [8, 8, 4], strides = [1, 1, 1]} : vector<8x9x8xf32> to vector<8x8x4xf32>
    %16 = vector.extract_strided_slice %8 {offsets = [0, 1, 0], sizes = [8, 8, 4], strides = [1, 1, 1]} : vector<8x9x8xf32> to vector<8x8x4xf32>
    %17 = vector.extract_strided_slice %11 {offsets = [0, 1, 0], sizes = [8, 8, 4], strides = [1, 1, 1]} : vector<8x9x8xf32> to vector<8x8x4xf32>
    %18 = tpu.concatenate %12, %13, %14, %15, %16, %17 in 2 : vector<8x8x8xf32>, vector<8x8x8xf32>, vector<8x8x8xf32>, vector<8x8x4xf32>, vector<8x8x4xf32>, vector<8x8x4xf32> -> vector<8x8x36xf32>
    %19 = vector.shape_cast %18 : vector<8x8x36xf32> to vector<64x36xf32>
    %c0_7 = arith.constant 0 : index
    %c0_8 = arith.constant 0 : index
    %20 = vector.load %arg4[%c0_7, %c0_8] : memref<36x8xf32, #tpu.memory_space<vmem>>, vector<36x8xf32>
    %cst = arith.constant dense<0.000000e+00> : vector<64x8xf32>
    %21 = tpu.matmul %19, %20, %cst {dimension_numbers = #tpu.dot_dimension_numbers<[1], [0], [0], [1], [0, 0, 1, 1], [], []>} : vector<64x36xf32>, vector<36x8xf32>, vector<64x8xf32> -> vector<64x8xf32>
    %c0_9 = arith.constant 0 : index
    %c0_10 = arith.constant 0 : index
    %22 = vector.load %arg5[%c0_9, %c0_10] : memref<1x8xf32, #tpu.memory_space<vmem>>, vector<1x8xf32>
    %23 = vector.broadcast %22 : vector<1x8xf32> to vector<64x8xf32>
    %24 = arith.addf %21, %23 : vector<64x8xf32>
    %25 = vector.shape_cast %24 : vector<64x8xf32> to vector<8x8x8xf32>
    %c0_11 = arith.constant 0 : index
    %c0_12 = arith.constant 0 : index
    %c0_13 = arith.constant 0 : index
    %c0_14 = arith.constant 0 : index
    %26 = vector.load %arg6[%c0_11, %c0_12, %c0_13, %c0_14] : memref<1x8x8x8xf32, #tpu.memory_space<vmem>>, vector<1x8x8x8xf32>
    %27 = vector.shape_cast %26 : vector<1x8x8x8xf32> to vector<8x8x8xf32>
    %28 = vector.shape_cast %25 : vector<8x8x8xf32> to vector<1x8x8x8xf32>
    tpu.vector_store %arg6[%c0_11, %c0_12, %c0_13, %c0_14], %28 {strides = array<i32>} : memref<1x8x8x8xf32, #tpu.memory_space<vmem>>, vector<1x8x8x8xf32>,
    return
  }
  func.func @transform_0(%arg0: i32, %arg1: i32) -> (i32, i32, i32, i32) {
    %c0_i32 = arith.constant 0 : i32
    %c0_i32_0 = arith.constant 0 : i32
    %c0_i32_1 = arith.constant 0 : i32
    return %arg0, %arg1, %c0_i32, %c0_i32_0 : i32, i32, i32, i32
  }
  func.func @transform_1(%arg0: i32, %arg1: i32) -> (i32, i32, i32, i32) {
    %c1_i32 = arith.constant 1 : i32
    %0 = arith.addi %arg1, %c1_i32 : i32
    %c16_i32 = arith.constant 16 : i32
    %1 = arith.muli %c16_i32, %0 : i32
    %c0_i32 = arith.constant 0 : i32
    %c0_i32_0 = arith.constant 0 : i32
    %c0_i32_1 = arith.constant 0 : i32
    return %arg0, %1, %c0_i32, %c0_i32_0 : i32, i32, i32, i32
  }
  func.func @transform_2(%arg0: i32, %arg1: i32) -> (i32, i32) {
    %c0_i32 = arith.constant 0 : i32
    %c0_i32_0 = arith.constant 0 : i32
    %c0_i32_1 = arith.constant 0 : i32
    return %c0_i32, %c0_i32_0 : i32, i32
  }
  func.func @transform_3(%arg0: i32, %arg1: i32) -> (i32, i32) {
    %c0_i32 = arith.constant 0 : i32
    %c0_i32_0 = arith.constant 0 : i32
    %c0_i32_1 = arith.constant 0 : i32
    return %c0_i32, %c0_i32_0 : i32, i32
  }
  func.func @transform_4(%arg0: i32, %arg1: i32) -> (i32, i32, i32, i32) {
    %c0_i32 = arith.constant 0 : i32
    %c0_i32_0 = arith.constant 0 : i32
    %c0_i32_1 = arith.constant 0 : i32
    return %arg0, %arg1, %c0_i32, %c0_i32_0 : i32, i32, i32, i32
  }
}

</mosaic_0001>

<bundles_post_ra>
// kernel: tpu_custom_call.1
= control target key start
LH: loop header
LB: loop body
LE: loop exit
PB: predicated region body
PF: predicated region fallthrough
CT: control target
= control target key end

     0   :  { %9 = vsyncpa [#allocation3], 0  ;;  %s1463_s0 = inlined_call_operand.vmem [shape: f32[2,18,9,8], index: 0, kind: input, shape index: {}]   ;;  %s1464_s1 = inlined_call_operand.vmem [shape: f32[2,18,9,8], index: 1, kind: input, shape index: {}]   ;;  %s1465_s2 = inlined_call_operand.vmem [shape: f32[36,8], index: 2, kind: input, shape index: {}]   ;;  %s1466_s3 = inlined_call_operand.vmem [shape: f32[1,8], index: 3, kind: input, shape index: {}]   ;;  %s1467_s4 = inlined_call_operand.hbm [shape: f32[2,8,8,8], index: 4, kind: output, shape index: {}]  }
   0x1   :  { %11 = vsyncpa [#allocation3 + $0x1], 0  ;;  %s1106_s15 = smov 0   ;;  %s1108_s16 = smov 0  }
   0x2   :  { %s1110_s17 = smov 0   ;;  %s1112_s18 = smov 0  }
   0x3   :  { %s1114_s19 = smov 0   ;;  %s1116_s20 = smov 0  }
   0x4 LB: > { %s861_s21 = sadd.s32 4294967295, %s1072_s20   ;;  %s862_s22 = sadd.s32 4294967294, %s1072_s20   ;;  %s1072_s20 = sphi %s1116_s20, %s17_s20   ;;  %s1068_s19 = sphi %s1114_s19, %s1474_s19   ;;  %s1064_s18 = sphi %s1112_s18, %s1473_s18   ;;  %s1060_s17 = sphi %s1110_s17, %s1472_s17   ;;  %s1056_s16 = sphi %s1108_s16, %s1471_s16   ;;  %s1052_s15 = sphi %s1106_s15, %s1470_s15  }
   0x5   : > { %s29_s23 = sadd.s32 1, %s1068_s19  ;;  %s140_s24 = sadd.s32 1, %s1060_s17 }
   0x6   : > { %p31_p0 = scmp.ge.s32.totalorder %s29_s23, 2  ;;  %p150_p1 = scmp.ne.s32.totalorder %s1060_s17, %s1056_s16 }
   0x7   : > { %p151_p2 = scmp.eq.s32.totalorder %s861_s21, 1  ;;  %p156_p3 = scmp.ne.s32.totalorder %s1056_s16, %s1052_s15 }
   0x8   : > { %s1476_s23 = smov (%p31_p0, %s29_s23), 0  ;;  %p157_p5 = scmp.eq.s32.totalorder %s862_s22, 1 }
   0x9   : > { %p1146_p4 = por %p151_p2, %p150_p1  ;;  %s135_s26 = ssub.s32 %s1068_s19, %s1476_s23 }
   0xa   : > { %p865_p6 = scmp.ge.s32.totalorder %s1072_s20, 1  ;;  %p138_p7 = scmp.eq.s32.totalorder %s135_s26, 0 }
   0xb   : > { %p1153_p8 = por %p157_p5, %p156_p3  ;;  %p221_p9 = scmp.lt.s32.totalorder %s1072_s20, 3 }
   0xc   : > { %s1159_s28 = scalar_select %p138_p7, %s1060_s17, %s140_s24  }
   0xd   : > { %p222_p10 = pnand %p865_p6, %p221_p9 }
   0xe   : > { %p274_p11 = scmp.lt.s32.totalorder (!%p222_p10), %s1064_s18, 1  ;;  %s1074_s8 = smov (!%p222_p10), 8  }
   0xf   : > { %225 = sbr.rel (%p222_p10) target bundleno = 430 (0x1ae), region = 36  ;;  %s1075_s9 = smov (!%p222_p10), 16  }
  0x10   : > { %s1076_s10 = smov (!%p222_p10), 24   ;;  %s1077_s11 = smov (!%p222_p10), 28  }
  0x11   : > { %s1078_s13 = smov (!%p222_p10), 32  }
  0x14   : > { %s1163_s29 = scalar_select %p274_p11, %s1064_s18, 1  ;;  %vm410_vm0 = vcmask 1046528   ;;  %v592_v36 = vld [vmem:[%s1465_s2 + $0x20] sm:$0xf]  ;;  %vm625_vm1 = vcmask 1043456   ;;  %v591_v43 = vld [vmem:[%s1465_s2 + $0x18] sm:$0xff] }
  0x15   : > { %900 = vmatprep.subr.msk.mxu0 %vm625_vm1, %v592_v36  ;;  %922 = vmatprep.subr.msk.mxu1 %vm625_vm1, %v592_v36  ;;  %v590_v44 = vld [vmem:[%s1465_s2 + $0x10] sm:$0xff]  ;;  %v589_v47 = vld [vmem:[%s1465_s2 + $0x8] sm:$0xff]  ;;  %v588_v48 = vld [vmem:[%s1465_s2] sm:$0xff]  ;;  %vm543_vm2 = vcmask 64512   ;;  %vm552_vm3 = vcmask 130048   ;;  %vm561_vm4 = vcmask 195584  }
  0x16   : > { %s932_s30 = smul.u32 288, %s1163_s29  ;;  %901 = vmatpush3.msk.msra.mxu0 %vm625_vm1, %v592_v36  ;;  %927 = vmatpush3.msk.msra.mxu1 %vm625_vm1, %v592_v36  ;;  %vm570_vm5 = vcmask 228352   ;;  %vm579_vm6 = vcmask 261120   ;;  %vm600_vm7 = vcmask 293888   ;;  %s265_s29 = sand.u32 1, %s1056_s16  }
  0x17   : > { %902 = vmatprep.subr.mxu0 %v591_v43  ;;  %923 = vmatprep.subr.mxu1 %v591_v43 }
  0x18   : > { %s1171_s7 = scalar_lea.vmem %s1463_s0, %s932_s30  ;;  %903 = vmatpush3.msra.mxu0 %v591_v43  ;;  %928 = vmatpush3.msra.mxu1 %v591_v43  ;;  %s885_s14 = sadd.s32 256, %s932_s30 }
  0x19   : > { %v1174_v0 = vld [vmem:[%s1171_s7 + $0x30] sm:$0xff]  ;;  %v1188_v4 = vld [vmem:[%s1171_s7 + $0xa0] sm:$0xff]  ;;  %v320_v7 = vld [vmem:[%s1171_s7 + $0x88] sm:$0x1]  ;;  %904 = vmatprep.subr.mxu0 %v590_v44  ;;  %924 = vmatprep.subr.mxu1 %v590_v44  ;;  %s1298_s24 = scalar_lea.vmem %s1464_s1, %s885_s14  ;;  %s866_s30 = sshll.u32 %s265_s29, 6 }
  0x1a   : > { %v305_v1 = vld [vmem:[%s1171_s7 + $0x10] sm:$0xff]  ;;  %347 = vrot.lane.b32.xlu1 %v1174_v0, %s1074_s8  ;;  %v1191_v5 = vld [vmem:[%s1171_s7 + $0x20] sm:$0xff]  ;;  %v304_v9 = vld [vmem:[%s1171_s7 + $0x8] sm:$0x1]  ;;  %v424_v13 = vrot.slane %v320_v7, 1  ;;  %v426_v18 = vrot.slane %v1188_v4, 1  ;;  %905 = vmatpush3.msra.mxu0 %v590_v44 }
  0x1b   : > { %345 = vrot.lane.b32.xlu0 %v305_v1, %s1074_s8  ;;  %v1181_v2 = vld [vmem:[%s1171_s7 + $0xb0] sm:$0xff]  ;;  %v1194_v6 = vld [vmem:[%s1171_s7 + $0x80] sm:$0xff]  ;;  %v412_v15 = vrot.slane %v304_v9, 1  ;;  %v324_v16 = vld [vmem:[%s1171_s7 + $0xa8] sm:$0x1]  ;;  %v414_v19 = vrot.slane %v1191_v5, 1  ;;  %929 = vmatpush3.msra.mxu1 %v590_v44 }
  0x1c   : > { %v321_v3 = vld [vmem:[%s1171_s7 + $0x90] sm:$0xff]  ;;  %v1198_v8 = vld [vmem:[%s1171_s7] sm:$0xff]  ;;  %v423_v12 = vrot.slane %v1194_v6, 1  ;;  %v308_v17 = vld [vmem:[%s1171_s7 + $0x28] sm:$0x1]  ;;  %v427_v22 = vrot.slane %v324_v16, 1  ;;  %906 = vmatprep.subr.mxu0 %v589_v47  ;;  %925 = vmatprep.subr.mxu1 %v589_v47 }
  0x1d   : > { %v1206_v10 = vld [vmem:[%s1171_s7 + $0xc0] sm:$0xff]  ;;  %v411_v14 = vrot.slane %v1198_v8, 1  ;;  %v415_v23 = vrot.slane %v308_v17, 1  ;;  %v322_v24 = vld [vmem:[%s1171_s7 + $0x98] sm:$0x1]  ;;  %v467_v26 = vrot.slane %v305_v1, 1  ;;  %907 = vmatpush3.msra.mxu0 %v589_v47  ;;  %930 = vmatpush3.msra.mxu1 %v589_v47 }
  0x1e   : > { %355 = vrot.lane.b32.xlu1 %v1181_v2, %s1074_s8  ;;  %v1209_v11 = vld [vmem:[%s1171_s7 + $0x40] sm:$0xff]  ;;  %v1222_v20 = vsel %vm410_vm0, %v423_v12, %v424_v13  ;;  %v306_v25 = vld [vmem:[%s1171_s7 + $0x18] sm:$0x1]  ;;  %v479_v27 = vrot.slane %v321_v3, 1  ;;  %v428_v28 = vsel %vm410_vm0, %v426_v18, %v427_v22  ;;  %v480_v30 = vrot.slane %v322_v24, 1  ;;  %v1246_v39 = vld [vmem:[%s1171_s7 + $0xd0] sm:$0xff]  ;;  %908 = vmatprep.subr.mxu0 %v588_v48 }
  0x1f   : > { %353 = vrot.lane.b32.xlu0 %v321_v3, %s1074_s8  ;;  %v413_v21 = vsel %vm410_vm0, %v411_v14, %v412_v15  ;;  %v416_v29 = vsel %vm410_vm0, %v414_v19, %v415_v23  ;;  %v468_v31 = vrot.slane %v306_v25, 1  ;;  %v326_v34 = vld [vmem:[%s1171_s7 + $0xb8] sm:$0x1]  ;;  %v470_v37 = vrot.slane %v1174_v0, 1  ;;  %v1249_v40 = vld [vmem:[%s1171_s7 + $0x50] sm:$0xff]  ;;  %926 = vmatprep.subr.mxu1 %v588_v48  ;;  %v1282_v55 = vld [vmem:[%s1171_s7 + $0xe0] sm:$0xff] }
  0x20   : > { %v481_v32 = vsel %vm410_vm0, %v479_v27, %v480_v30  ;;  %v310_v35 = vld [vmem:[%s1171_s7 + $0x38] sm:$0x1]  ;;  %v482_v38 = vrot.slane %v1181_v2, 1  ;;  %v483_v41 = vrot.slane %v326_v34, 1  ;;  %v333_v49 = vld [vmem:[%s1171_s7 + $0xf0] sm:$0xff]  ;;  %909 = vmatpush3.msra.mxu0 %v588_v48  ;;  %931 = vmatpush3.msra.mxu1 %v588_v48  ;;  %v429_v53 = vrot.slane %v1206_v10, 1 }
  0x21   : > { %v469_v33 = vsel %vm410_vm0, %v467_v26, %v468_v31  ;;  %v471_v42 = vrot.slane %v310_v35, 1  ;;  %v317_v50 = vld [vmem:[%s1171_s7 + $0x70] sm:$0xff]  ;;  %v328_v51 = vld [vmem:[%s1171_s7 + $0xc8] sm:$0x1]  ;;  %v417_v54 = vrot.slane %v1209_v11, 1  ;;  %v1285_v56 = vld [vmem:[%s1171_s7 + $0x60] sm:$0xff] }
  0x22   : > { %385 = vrot.lane.b32.xlu1 %v1188_v4, %s1075_s9  ;;  %v484_v45 = vsel %vm410_vm0, %v482_v38, %v483_v41  ;;  %v312_v52 = vld [vmem:[%s1171_s7 + $0x48] sm:$0x1]  ;;  %v430_v57 = vrot.slane %v328_v51, 1  ;;  %v335_v61 = vld [vmem:[%s1298_s24] sm:$0xff]  ;;  %v432_v0 = vrot.slane %v1282_v55, 1  ;;  %v420_v1 = vrot.slane %v1285_v56, 1 }
  0x23   : > { %377 = vrot.lane.b32.xlu0 %v1191_v5, %s1075_s9  ;;  %v472_v46 = vsel %vm410_vm0, %v470_v37, %v471_v42  ;;  %v418_v58 = vrot.slane %v312_v52, 1  ;;  %v332_v62 = vld [vmem:[%s1171_s7 + $0xe8] sm:$0x1]  ;;  %v330_v7 = vld [vmem:[%s1171_s7 + $0xd8] sm:$0x1]  ;;  %v485_v12 = vrot.slane %v1246_v39, 1 }
  0x24   : > { %v431_v59 = vsel %vm410_vm0, %v429_v53, %v430_v57  ;;  %v316_v63 = vld [vmem:[%s1171_s7 + $0x68] sm:$0x1]  ;;  %v433_v2 = vrot.slane %v332_v62, 1  ;;  %v314_v9 = vld [vmem:[%s1171_s7 + $0x58] sm:$0x1]  ;;  %v473_v13 = vrot.slane %v1249_v40, 1 }
  0x25   : > { %v419_v60 = vsel %vm410_vm0, %v417_v54, %v418_v58  ;;  %v421_v3 = vrot.slane %v316_v63, 1  ;;  %v486_v16 = vrot.slane %v330_v7, 1  ;;  %v474_v17 = vrot.slane %v314_v9, 1  ;;  %v334_v18 = vld [vmem:[%s1171_s7 + $0xf8] sm:$0x1]  ;;  %s1079_s14 = smov [#allocation2]  }
  0x26   : > { %387 = vrot.lane.b32.xlu1 %v1206_v10, %s1075_s9  ;;  %v434_v14 = vsel %vm410_vm0, %v432_v0, %v433_v2  ;;  %v318_v19 = vld [vmem:[%s1171_s7 + $0x78] sm:$0x1]  ;;  %v476_v22 = vrot.slane %v317_v50, 1  ;;  %v489_v25 = vrot.slane %v334_v18, 1  ;;  %v516_v30 = vrot.slane %v335_v61, 1  ;;  %s1000_s21 = sshll.u32 %s1079_s14, 4  ;;  %s1001_s21 = int_to_ptr.vmem [resolvable:$false] %s1000_s21 }
  0x27   : > { %379 = vrot.lane.b32.xlu0 %v1209_v11, %s1075_s9  ;;  %v422_v15 = vsel %vm410_vm0, %v420_v1, %v421_v3  ;;  %v487_v23 = vsel %vm410_vm0, %v485_v12, %v486_v16  ;;  %v475_v24 = vsel %vm410_vm0, %v473_v13, %v474_v17  ;;  %v477_v26 = vrot.slane %v318_v19, 1  ;;  %s1002_s22 = scalar_lea.vmem %s1001_s21, 2048 }
  0x2a   : > { %443 = vrot.lane.b32.xlu1 %v1222_v20, %s1076_s10 }
  0x2b   : > { %435 = vrot.lane.b32.xlu0 %v413_v21, %s1076_s10  ;;  %v488_v21 = vrot.slane %v333_v49, 1 }
  0x2d   : > { %v490_v27 = vsel %vm410_vm0, %v488_v21, %v489_v25 }
  0x2e   : > { %445 = vrot.lane.b32.xlu1 %v428_v28, %s1076_s10 }
  0x2f   : > { %437 = vrot.lane.b32.xlu0 %v416_v29, %s1076_s10 }
  0x32   : > { %499 = vrot.lane.b32.xlu1 %v481_v32, %s1077_s11 }
  0x33   : > { %491 = vrot.lane.b32.xlu0 %v469_v33, %s1077_s11 }
  0x36   : > { %357 = vrot.lane.b32.xlu1 %v1246_v39, %s1074_s8 }
  0x37   : > { %349 = vrot.lane.b32.xlu0 %v1249_v40, %s1074_s8 }
  0x3a   : > { %501 = vrot.lane.b32.xlu1 %v484_v45, %s1077_s11 }
  0x3b   : > { %493 = vrot.lane.b32.xlu0 %v472_v46, %s1077_s11 }
  0x3e   : > { %527 = vrot.lane.b32.xlu1 %v428_v28, %s1078_s13  ;;  %v478_v28 = vsel %vm410_vm0, %v476_v22, %v477_v26 }
  0x3f   : > { %519 = vrot.lane.b32.xlu0 %v416_v29, %s1078_s13  ;;  %v336_v29 = vld [vmem:[%s1298_s24 + $0x8] sm:$0x1] }
  0x40   : > { %v517_v31 = vrot.slane %v336_v29, 1 }
  0x42   : > { %359 = vrot.lane.b32.xlu1 %v333_v49, %s1074_s8  ;;  %v518_v32 = vsel %vm410_vm0, %v516_v30, %v517_v31 }
  0x43   : > { %351 = vrot.lane.b32.xlu0 %v317_v50, %s1074_s8 }
  0x46   : > { %389 = vrot.lane.b32.xlu1 %v1282_v55, %s1075_s9 }
  0x47   : > { %381 = vrot.lane.b32.xlu0 %v1285_v56, %s1075_s9 }
  0x4a   : > { %529 = vrot.lane.b32.xlu1 %v431_v59, %s1078_s13 }
  0x4b   : > { %521 = vrot.lane.b32.xlu0 %v419_v60, %s1078_s13 }
  0x4e   : > { %391 = vrot.lane.b32.xlu1 %v335_v61, %s1075_s9 }
  0x4f   : > { %383 = vrot.lane.b32.xlu0 %v1194_v6, %s1075_s9 }
  0x52   : > { %447 = vrot.lane.b32.xlu1 %v431_v59, %s1076_s10 }
  0x53   : > { %439 = vrot.lane.b32.xlu0 %v419_v60, %s1076_s10 }
  0x56   : > { %449 = vrot.lane.b32.xlu1 %v434_v14, %s1076_s10 }
  0x57   : > { %441 = vrot.lane.b32.xlu0 %v422_v15, %s1076_s10  ;;  %s267_s10 = scalar_lea.vmem [#allocation2], %s866_s30 }
  0x58   : > { %s758_s26 = sshll.u32 %s267_s10, 4  ;;  %s1411_s26 = int_to_ptr.vmem [resolvable:$true] %s758_s26 }
  0x59   : > { %p1003_p1 = scmp.lt.s32.totalorder %s1411_s26, %s1001_s21 }
  0x5a   : > { %503 = vrot.lane.b32.xlu1 %v487_v23, %s1077_s11 }
  0x5b   : > { %495 = vrot.lane.b32.xlu0 %v475_v24, %s1077_s11 }
  0x5e   : > { %505 = vrot.lane.b32.xlu1 %v490_v27, %s1077_s11 }
  0x5f   : > { %497 = vrot.lane.b32.xlu0 %v478_v28, %s1077_s11  ;;  %s886_s11 = sshll.u32 %s1064_s18, 10  ;;  %s1417_s18 = scalar_lea.sflag [#allocation3], %s265_s29 }
  0x60   : > { %s1407_s12 = scalar_lea.hbm %s1467_s4, %s886_s11 }
  0x62   : > { %531 = vrot.lane.b32.xlu1 %v434_v14, %s1078_s13 }
  0x63   : > { %523 = vrot.lane.b32.xlu0 %v422_v15, %s1078_s13 }
  0x66   : > { %533 = vrot.lane.b32.xlu1 %v518_v32, %s1078_s13 }
  0x67   : > { %525 = vrot.lane.b32.xlu0 %v1222_v20, %s1078_s13  ;;  %s996_s13 = scalar_lea.vmem %s1411_s26, 1024 }
  0x68   : > { %p997_p12 = scmp.ne.s32.totalorder %s1411_s26, %s996_s13  ;;  %p1004_p2 = scmp.lt.s32.totalorder %s1002_s22, %s996_s13 }
  0x6a   : > { %p998_p13 = pnand %p997_p12, %p1146_p4  ;;  %p1005_p3 = por %p1004_p2, %p1003_p1 }
  0x6c   : > { %p999_p0 = pneg %p998_p13 }
  0x6e   : > { %p1006_p5 = pnand %p1005_p3, %p999_p0 }
  0x8c   : > { %v348_v33 = vpop.permute.xlu1 %347 }
  0x8d   : > { %v346_v34 = vpop.permute.xlu0 %345  ;;  %v545_v2 = vsel %vm543_vm2, %v1191_v5, %v348_v33 }
  0x8e   : > { %v544_v50 = vsel %vm543_vm2, %v1198_v8, %v346_v34 }
  0x90   : > { %v356_v35 = vpop.permute.xlu1 %355 }
  0x91   : > { %v354_v36 = vpop.permute.xlu0 %353  ;;  %v549_v3 = vsel %vm543_vm2, %v1188_v4, %v356_v35 }
  0x92   : > { %v548_v51 = vsel %vm543_vm2, %v1194_v6, %v354_v36 }
  0x94   : > { %v386_v37 = vpop.permute.xlu1 %385 }
  0x95   : > { %v378_v38 = vpop.permute.xlu0 %377  ;;  %v557_v52 = vsel %vm552_vm3, %v548_v51, %v386_v37 }
  0x96   : > { %v553_v53 = vsel %vm552_vm3, %v544_v50, %v378_v38 }
  0x98   : > { %v388_v39 = vpop.permute.xlu1 %387 }
  0x99   : > { %v380_v40 = vpop.permute.xlu0 %379  ;;  %v558_v7 = vsel %vm552_vm3, %v549_v3, %v388_v39 }
  0x9a   : > { %v554_v9 = vsel %vm552_vm3, %v545_v2, %v380_v40 }
  0x9c   : > { %v444_v41 = vpop.permute.xlu1 %443 }
  0x9d   : > { %v436_v42 = vpop.permute.xlu0 %435  ;;  %v566_v54 = vsel %vm561_vm4, %v557_v52, %v444_v41 }
  0x9e   : > { %v562_v57 = vsel %vm561_vm4, %v553_v53, %v436_v42 }
  0xa0   : > { %v446_v43 = vpop.permute.xlu1 %445 }
  0xa1   : > { %v438_v44 = vpop.permute.xlu0 %437  ;;  %v567_v12 = vsel %vm561_vm4, %v558_v7, %v446_v43 }
  0xa2   : > { %v563_v13 = vsel %vm561_vm4, %v554_v9, %v438_v44 }
  0xa4   : > { %v500_v45 = vpop.permute.xlu1 %499 }
  0xa5   : > { %v492_v46 = vpop.permute.xlu0 %491  ;;  %v575_v58 = vsel %vm570_vm5, %v566_v54, %v500_v45 }
  0xa6   : > { %v571_v59 = vsel %vm570_vm5, %v562_v57, %v492_v46 }
  0xa8   : > { %v358_v47 = vpop.permute.xlu1 %357 }
  0xa9   : > { %v350_v48 = vpop.permute.xlu0 %349  ;;  %v550_v29 = vsel %vm543_vm2, %v1206_v10, %v358_v47 }
  0xaa   : > { %v546_v30 = vsel %vm543_vm2, %v1209_v11, %v350_v48 }
  0xac   : > { %v502_v20 = vpop.permute.xlu1 %501 }
  0xad   : > { %v494_v49 = vpop.permute.xlu0 %493  ;;  %v576_v14 = vsel %vm570_vm5, %v567_v12, %v502_v20  ;;  %v869_v20 = vld [vmem:[%s1466_s3] ss:$0 sm:$0xff] }
  0xae   : > { %v572_v15 = vsel %vm570_vm5, %v563_v13, %v494_v49 }
  0xb0   : > { %v528_v60 = vpop.permute.xlu1 %527 }
  0xb1   : > { %v520_v8 = vpop.permute.xlu0 %519  ;;  %v584_v6 = vsel %vm579_vm6, %v575_v58, %v528_v60 }
  0xb2   : > { %v580_v61 = vsel %vm579_vm6, %v571_v59, %v520_v8  ;;  %916 = vmatprep.mubr.msk.f32.mxu1 %vm600_vm7, %v584_v6 }
  0xb3   : > { %910 = vmatprep.mubr.msk.f32.mxu0 %vm600_vm7, %v580_v61 }
  0xb4   : > { %v360_v62 = vpop.permute.xlu1 %359 }
  0xb5   : > { %v352_v63 = vpop.permute.xlu0 %351  ;;  %v551_v10 = vsel %vm543_vm2, %v1282_v55, %v360_v62 }
  0xb6   : > { %v547_v11 = vsel %vm543_vm2, %v1285_v56, %v352_v63 }
  0xb8   : > { %v390_v0 = vpop.permute.xlu1 %389 }
  0xb9   : > { %v382_v1 = vpop.permute.xlu0 %381  ;;  %v559_v31 = vsel %vm552_vm3, %v550_v29, %v390_v0 }
  0xba   : > { %v555_v32 = vsel %vm552_vm3, %v546_v30, %v382_v1 }
  0xbc   : > { %v530_v16 = vpop.permute.xlu1 %529 }
  0xbd   : > { %v522_v17 = vpop.permute.xlu0 %521  ;;  %v585_v18 = vsel %vm579_vm6, %v576_v14, %v530_v16 }
  0xbe   : > { %v581_v5 = vsel %vm579_vm6, %v572_v15, %v522_v17  ;;  %917 = vmatmul.mubr.msk.f32.vlgmr.msra.gmra.mxu1 %vm600_vm7, %v585_v18 }
  0xbf   : > { %911 = vmatmul.mubr.msk.f32.vlgmr.msra.gmra.mxu0 %vm600_vm7, %v581_v5 }
  0xc0   : > { %v392_v4 = vpop.permute.xlu1 %391 }
  0xc1   : > { %v384_v19 = vpop.permute.xlu0 %383  ;;  %v560_v41 = vsel %vm552_vm3, %v551_v10, %v392_v4 }
  0xc2   : > { %v556_v42 = vsel %vm552_vm3, %v547_v11, %v384_v19 }
  0xc4   : > { %v448_v21 = vpop.permute.xlu1 %447 }
  0xc5   : > { %v440_v22 = vpop.permute.xlu0 %439  ;;  %v568_v33 = vsel %vm561_vm4, %v559_v31, %v448_v21 }
  0xc6   : > { %v564_v34 = vsel %vm561_vm4, %v555_v32, %v440_v22 }
  0xc8   : > { %v450_v23 = vpop.permute.xlu1 %449 }
  0xc9   : > { %v442_v24 = vpop.permute.xlu0 %441  ;;  %v569_v43 = vsel %vm561_vm4, %v560_v41, %v450_v23 }
  0xca   : > { %v565_v55 = vsel %vm561_vm4, %v556_v42, %v442_v24 }
  0xcc   : > { %v504_v25 = vpop.permute.xlu1 %503 }
  0xcd   : > { %v496_v26 = vpop.permute.xlu0 %495  ;;  %v577_v35 = vsel %vm570_vm5, %v568_v33, %v504_v25 }
  0xce   : > { %v573_v36 = vsel %vm570_vm5, %v564_v34, %v496_v26 }
  0xd0   : > { %v506_v27 = vpop.permute.xlu1 %505 }
  0xd1   : > { %v498_v28 = vpop.permute.xlu0 %497  ;;  %v578_v56 = vsel %vm570_vm5, %v569_v43, %v506_v27 }
  0xd2   : > { %v574_v44 = vsel %vm570_vm5, %v565_v55, %v498_v28 }
  0xd4   : > { %v532_v37 = vpop.permute.xlu1 %531 }
  0xd5   : > { %v524_v38 = vpop.permute.xlu0 %523  ;;  %v586_v39 = vsel %vm579_vm6, %v577_v35, %v532_v37 }
  0xd6   : > { %v582_v40 = vsel %vm579_vm6, %v573_v36, %v524_v38  ;;  %919 = vmatprep.mubr.msk.f32.mxu1 %vm600_vm7, %v586_v39 }
  0xd7   : > { %913 = vmatprep.mubr.msk.f32.mxu0 %vm600_vm7, %v582_v40 }
  0xd8   : > { %v534_v45 = vpop.permute.xlu1 %533 }
  0xd9   : > { %v526_v46 = vpop.permute.xlu0 %525  ;;  %v587_v47 = vsel %vm579_vm6, %v578_v56, %v534_v45 }
  0xda   : > { %v583_v48 = vsel %vm579_vm6, %v574_v44, %v526_v46  ;;  %920 = vmatmul.mubr.msk.f32.gmra.mxu1 %vm600_vm7, %v587_v47 }
  0xdb   : > { %914 = vmatmul.mubr.msk.f32.gmra.mxu0 %vm600_vm7, %v583_v48 }
 0x17e   : > { %v918_v50 = vpop.f32.mrf.mxu1 }
 0x17f   : > { %v912_v49 = vpop.f32.mrf.mxu0  ;;  %v721_v52 = vadd.f32 %v918_v50, %v869_v20 }
 0x180   : > { %v701_v51 = vadd.f32 %v912_v49, %v869_v20  ;;  %v715_v54 = vpop.f32.mrf.mxu1 }
 0x181   : > { %v695_v53 = vpop.f32.mrf.mxu0  ;;  %739 = vst.msk [vmem:[%s267_s10 + $0x28] sm:$0xff] %vm543_vm2, %v721_v52  ;;  %v716_v58 = vadd.f32 %v869_v20, %v715_v54 }
 0x182   : > { %735 = vst.msk [vmem:[%s267_s10 + $0x8] sm:$0xff] %vm543_vm2, %v701_v51  ;;  %v696_v57 = vadd.f32 %v869_v20, %v695_v53 }
 0x183   : > { %738 = vst.msk [vmem:[%s267_s10 + $0x20] sm:$0xff] %vm543_vm2, %v716_v58 }
 0x184   : > { %734 = vst.msk [vmem:[%s267_s10] sm:$0xff] %vm543_vm2, %v696_v57 }
 0x19a   : > { %v921_v60 = vpop.f32.mrf.mxu1 }
 0x19b   : > { %v915_v59 = vpop.f32.mrf.mxu0  ;;  %v731_v61 = vadd.f32 %v921_v60, %v869_v20 }
 0x19c   : > { %v711_v8 = vadd.f32 %v915_v59, %v869_v20  ;;  %v725_v62 = vpop.f32.mrf.mxu1 }
 0x19d   : > { %v705_v6 = vpop.f32.mrf.mxu0  ;;  %741 = vst.msk [vmem:[%s267_s10 + $0x38] sm:$0xff] %vm543_vm2, %v731_v61  ;;  %v726_v0 = vadd.f32 %v869_v20, %v725_v62 }
 0x19e   : > { %737 = vst.msk [vmem:[%s267_s10 + $0x18] sm:$0xff] %vm543_vm2, %v711_v8  ;;  %v706_v63 = vadd.f32 %v869_v20, %v705_v6 }
 0x19f   : > { %740 = vst.msk [vmem:[%s267_s10 + $0x30] sm:$0xff] %vm543_vm2, %v726_v0 }
 0x1a0   : > { %736 = vst.msk [vmem:[%s267_s10 + $0x10] sm:$0xff] %vm543_vm2, %v706_v63 }
 0x1a1   : > { %1009 = shalt.err (!%p1006_p5)
}
 0x1a2   : > { %s1010_s24 = scalar_lea.hbm %s1407_s12, 1024  ;;  %s1014_s7 = scalar_lea.hbm %s1467_s4, 2048 }
 0x1a3   : > { %p1011_p6 = scmp.ne.s32.totalorder %s1407_s12, %s1010_s24  ;;  %p1015_p10 = scmp.lt.s32.totalorder %s1407_s12, %s1467_s4 }
 0x1a4   : > { %p1016_p11 = scmp.lt.s32.totalorder %s1014_s7, %s1010_s24 }
 0x1a5   : > { %p1012_p7 = pnand %p1011_p6, %p1146_p4 }
 0x1a6   : > { %p1017_p12 = por %p1016_p11, %p1015_p10 }
 0x1a7   : > { %p1013_p9 = pneg %p1012_p7 }
 0x1a9   : > { %p1018_p13 = pnand %p1017_p12, %p1013_p9 }
 0x1ab   : > { %1021 = shalt.err (!%p1018_p13)
}
 0x1ac   : > { %s1080_s11 = smov 128  }
 0x1ad   : > { %934 = dma.vmem_to_hbm [thread:$0]  (%p1146_p4), %s1411_s26, 1024, %s1407_s12, %s1417_s18, %s1080_s11, %s1080_s11, %s1074_s8  }
 0x1ae PF: > { %p941_p0 = scmp.ge.s32.totalorder %s1072_s20, 2  ;;  %s773_s5 = sand.u32 1, %s1052_s15  }
 0x1af   : > { %s774_s6 = scalar_lea.sflag [#allocation3], %s773_s5 }
 0x1b0   : > { %p937_p1 = pnand %p941_p0, %p1153_p8 }
 0x1b2   : > { %p938_p2 = pneg %p937_p1 }
 0x1b4   : > { %1047 = dma.done.wait (%p938_p2), %s774_s6, 1024  }
 0x1b5   : > { %1049 = vsyncadd (%p938_p2), %s774_s6, 4294966272  ;;  %s17_s20 = sadd.s32 1, %s1072_s20   ;;  %s1470_s15 = smov %s1056_s16 }
 0x1b6   : > { %p14_p3 = scmp.ge.s32.totalorder %s17_s20, 4   ;;  %s1471_s16 = smov %s1060_s17 }
 0x1b7   : > { %s1472_s17 = smov %s1159_s28  ;;  %s1473_s18 = smov %s1068_s19 }
 0x1b8   : > { %s1474_s19 = smov %s1476_s23  ;;  %16 = sbr.rel (!%p14_p3) target bundleno = 4 (0x4), region = 74 }
 0x1bd   :  { %779 = vsyncpa [#allocation3], 1 }
 0x1be   :  { %781 = vsyncpa [#allocation3 + $0x1], 1 }

</bundles_post_ra>
